<compile_context>
chip_gen: v5e
topology: v5e:2x2
jax: 0.10.0
libtpu: 0.0.40
codegen_flags: <defaults>
</compile_context>

<pallas_src>
import functools

import jax
import jax.numpy as jnp
import numpy as np
from jax.experimental import pallas as pl
from jax.experimental.pallas import tpu as pltpu


def _sigmoid(x):
    # exp goes to the EUP; elementwise math stays in f32 (safe on v5e too).
    return 1.0 / (1.0 + jnp.exp(-x))


def _pick_hw_tile(hw, max_tile=8 * 1024):
    """Largest spatial tile that is a multiple of 128, divides hw, and <= max_tile."""
    if hw <= max_tile:
        return hw
    t = (max_tile // 128) * 128
    while t >= 128:
        if hw % t == 0:
            return t
        t -= 128
    return hw  # fallback: whole image per step (still correct)


def _pool_mlp_kernel(x_ref,
                     w1m_ref, b1m_ref, w2m_ref, b2m_ref,
                     w1a_ref, b1a_ref, w2a_ref, b2a_ref,
                     o_ref,
                     max_scr, sum_scr,
                     *, inv_hw):
    """Global max/avg pool over H*W + the two FC branches + sigmoids.

    x_ref   : (1, C, T_hw)  spatial tile, C on sublanes, H*W on lanes (lane-dense)
    w1*_ref : (C, Cr)       Linear1 weight, pre-transposed to (in, out)
    b1*_ref : (1, Cr)
    w2*_ref : (C, Cr)       Linear2 weight in PyTorch (out, in) layout
    b2*_ref : (C, 1)
    o_ref   : (1, C, 1)     final per-(batch, channel) attention weight
    """
    t = pl.program_id(1)
    n_t = pl.num_programs(1)

    @pl.when(t == 0)
    def _():
        max_scr[...] = jnp.full_like(max_scr, -jnp.inf)
        sum_scr[...] = jnp.zeros_like(sum_scr)

    x = x_ref[0]                                                   # (C, T_hw)
    max_scr[...] = jnp.maximum(max_scr[...],
                               jnp.max(x, axis=-1, keepdims=True))  # lane reduce
    sum_scr[...] = sum_scr[...] + jnp.sum(x, axis=-1, keepdims=True)

    @pl.when(t == n_t - 1)
    def _():
        v_max = max_scr[...]                                       # (C, 1)
        v_avg = sum_scr[...] * inv_hw                              # (C, 1)

        def branch(v, w1, b1, w2, b2):
            # Linear(C -> Cr) + ReLU: broadcast-mul + sublane reduction (no transpose)
            h = jnp.sum(v * w1[...], axis=0, keepdims=True) + b1[...]    # (1, Cr)
            h = jnp.maximum(h, 0.0)
            # Linear(Cr -> C) + Sigmoid: broadcast-mul + lane reduction
            o = jnp.sum(w2[...] * h, axis=1, keepdims=True) + b2[...]    # (C, 1)
            return _sigmoid(o)

        wm = branch(v_max, w1m_ref, b1m_ref, w2m_ref, b2m_ref)
        wa = branch(v_avg, w1a_ref, b1a_ref, w2a_ref, b2a_ref)
        o_ref[...] = _sigmoid(wm + wa).reshape(o_ref.shape)


def _scale_kernel(x_ref, w_ref, o_ref):
    # x_ref: (1, C, T_hw); w_ref: (1, C, 1); o_ref: (1, C, T_hw)  -- lane-dense store
    o_ref[...] = x_ref[...] * w_ref[...]


def channel_attention_forward(x_nchw,
                              w1_max, b1_max, w2_max, b2_max,
                              w1_avg, b1_avg, w2_avg, b2_avg,
                              *, max_hw_tile=8 * 1024):
    """ChannelAttentionModul forward.

    x_nchw : (N, C, H, W) float32
    w1_*   : (Cr, C)   b1_* : (Cr,)   (PyTorch nn.Linear(in=C, out=Cr))
    w2_*   : (C, Cr)   b2_* : (C,)    (PyTorch nn.Linear(in=Cr, out=C))
    returns: (N, C, H, W)
    """
    N, C, H, W = x_nchw.shape
    Cr = w1_max.shape[0]
    HW = H * W

    # Free, contiguity-preserving view: C stays on sublanes, H*W is lane-dense.
    x = x_nchw.reshape(N, C, HW)

    T_hw = _pick_hw_tile(HW, max_hw_tile)
    n_t = HW // T_hw

    # Parameter layouts chosen so the kernel needs no transposes.
    w1m = jnp.transpose(w1_max)          # (C, Cr)
    b1m = b1_max.reshape(1, Cr)
    w2m = w2_max                         # (C, Cr)
    b2m = b2_max.reshape(C, 1)
    w1a = jnp.transpose(w1_avg)
    b1a = b1_avg.reshape(1, Cr)
    w2a = w2_avg
    b2a = b2_avg.reshape(C, 1)

    spec_w1 = pl.BlockSpec((C, Cr), lambda n, t: (0, 0))
    spec_b1 = pl.BlockSpec((1, Cr), lambda n, t: (0, 0))
    spec_w2 = pl.BlockSpec((C, Cr), lambda n, t: (0, 0))
    spec_b2 = pl.BlockSpec((C, 1), lambda n, t: (0, 0))

    pool_cost = pl.CostEstimate(
        flops=2 * N * (HW * C + 2 * C * Cr),
        transcendentals=6 * N * C,
        bytes_accessed=4 * (N * C * HW + N * C + 4 * C * Cr + 2 * Cr + 2 * C))

    weight = pl.pallas_call(
        functools.partial(_pool_mlp_kernel, inv_hw=1.0 / float(HW)),
        out_shape=jax.ShapeDtypeStruct((N, C, 1), jnp.float32),
        grid_spec=pltpu.PrefetchScalarGridSpec(
            num_scalar_prefetch=0,
            grid=(N, n_t),
            in_specs=[
                pl.BlockSpec((1, C, T_hw), lambda n, t: (n, 0, t)),
                spec_w1, spec_b1, spec_w2, spec_b2,
                spec_w1, spec_b1, spec_w2, spec_b2,
            ],
            out_specs=pl.BlockSpec((1, C, 1), lambda n, t: (n, 0, 0)),
            scratch_shapes=[pltpu.VMEM((C, 1), jnp.float32),
                            pltpu.VMEM((C, 1), jnp.float32)],
        ),
        compiler_params=pltpu.CompilerParams(
            dimension_semantics=("parallel", "arbitrary")),
        cost_estimate=pool_cost,
    )(x, w1m, b1m, w2m, b2m, w1a, b1a, w2a, b2a)

    scale_cost = pl.CostEstimate(
        flops=N * C * HW,
        transcendentals=0,
        bytes_accessed=4 * (2 * N * C * HW + N * C))

    out = pl.pallas_call(
        _scale_kernel,
        out_shape=jax.ShapeDtypeStruct((N, C, HW), jnp.float32),
        grid_spec=pltpu.PrefetchScalarGridSpec(
            num_scalar_prefetch=0,
            grid=(N, n_t),
            in_specs=[
                pl.BlockSpec((1, C, T_hw), lambda n, t: (n, 0, t)),
                pl.BlockSpec((1, C, 1), lambda n, t: (n, 0, 0)),
            ],
            out_specs=pl.BlockSpec((1, C, T_hw), lambda n, t: (n, 0, t)),
        ),
        compiler_params=pltpu.CompilerParams(
            dimension_semantics=("parallel", "parallel")),
        cost_estimate=scale_cost,
    )(x, weight)

    return out.reshape(N, C, H, W)


def _reference_forward(x, w1_max, b1_max, w2_max, b2_max,
                       w1_avg, b1_avg, w2_avg, b2_avg):
    """Pure-JAX reference mirroring the PyTorch module."""
    max_in = jnp.max(x, axis=(2, 3))     # (N, C)
    avg_in = jnp.mean(x, axis=(2, 3))    # (N, C)

    def fc(v, w1, b1, w2, b2):
        h = jnp.maximum(v @ w1.T + b1, 0.0)
        return jax.nn.sigmoid(h @ w2.T + b2)

    mw = fc(max_in, w1_max, b1_max, w2_max, b2_max)
    aw = fc(avg_in, w1_avg, b1_avg, w2_avg, b2_avg)
    wt = jax.nn.sigmoid(mw + aw)         # (N, C)
    return x * wt[:, :, None, None]


if __name__ == "__main__":
    key = jax.random.PRNGKey(0)
    keys = jax.random.split(key, 9)

    N, C, H, W = 2, 4, 16, 16
    r = 0.5
    Cr = int(C * r)

    x = jax.random.normal(keys[0], (N, C, H, W), dtype=jnp.float32)
    w1_max = jax.random.normal(keys[1], (Cr, C), dtype=jnp.float32) * 0.5
    b1_max = jax.random.normal(keys[2], (Cr,), dtype=jnp.float32) * 0.1
    w2_max = jax.random.normal(keys[3], (C, Cr), dtype=jnp.float32) * 0.5
    b2_max = jax.random.normal(keys[4], (C,), dtype=jnp.float32) * 0.1
    w1_avg = jax.random.normal(keys[5], (Cr, C), dtype=jnp.float32) * 0.5
    b1_avg = jax.random.normal(keys[6], (Cr,), dtype=jnp.float32) * 0.1
    w2_avg = jax.random.normal(keys[7], (C, Cr), dtype=jnp.float32) * 0.5
    b2_avg = jax.random.normal(keys[8], (C,), dtype=jnp.float32) * 0.1

    out = channel_attention_forward(x, w1_max, b1_max, w2_max, b2_max,
                                    w1_avg, b1_avg, w2_avg, b2_avg)
    out = jax.block_until_ready(out)

    ref = _reference_forward(x, w1_max, b1_max, w2_max, b2_max,
                             w1_avg, b1_avg, w2_avg, b2_avg)
    ref = jax.block_until_ready(ref)

    assert out.shape == (N, C, H, W), out.shape
    np.testing.assert_allclose(np.asarray(out), np.asarray(ref),
                               rtol=1e-5, atol=1e-5)
    print("KERNEL_OK")
</pallas_src>

<mosaic_0001>
module attributes {stable_mosaic.version = 11 : i64} {
  func.func @_pool_mlp_kernel(%arg0: i32, %arg1: i32, %arg2: memref<1x4x256xf32, #tpu.memory_space<vmem>>, %arg3: memref<4x2xf32, #tpu.memory_space<vmem>>, %arg4: memref<1x2xf32, #tpu.memory_space<vmem>>, %arg5: memref<4x2xf32, #tpu.memory_space<vmem>>, %arg6: memref<4x1xf32, #tpu.memory_space<vmem>>, %arg7: memref<4x2xf32, #tpu.memory_space<vmem>>, %arg8: memref<1x2xf32, #tpu.memory_space<vmem>>, %arg9: memref<4x2xf32, #tpu.memory_space<vmem>>, %arg10: memref<4x1xf32, #tpu.memory_space<vmem>>, %arg11: memref<1x4x1xf32, #tpu.memory_space<vmem>>, %arg12: memref<4x1xf32, #tpu.memory_space<vmem>>, %arg13: memref<4x1xf32, #tpu.memory_space<vmem>>) attributes {dimension_semantics = [#tpu.dimension_semantics<parallel>, #tpu.dimension_semantics<arbitrary>], iteration_bounds = array<i64: 2, 1>, scalar_prefetch = 0 : i64, scratch_operands = 2 : i64, tpu.core_type = #tpu.core_type<tc>, window_params = [{transform_indices = @transform_0, window_bounds = array<i64: 1, 4, 256>}, {pipeline_mode = #tpu.pipeline_mode<synchronous>, transform_indices = @transform_1, window_bounds = array<i64: 4, 2>}, {pipeline_mode = #tpu.pipeline_mode<synchronous>, transform_indices = @transform_2, window_bounds = array<i64: 1, 2>}, {pipeline_mode = #tpu.pipeline_mode<synchronous>, transform_indices = @transform_3, window_bounds = array<i64: 4, 2>}, {pipeline_mode = #tpu.pipeline_mode<synchronous>, transform_indices = @transform_4, window_bounds = array<i64: 4, 1>}, {pipeline_mode = #tpu.pipeline_mode<synchronous>, transform_indices = @transform_5, window_bounds = array<i64: 4, 2>}, {pipeline_mode = #tpu.pipeline_mode<synchronous>, transform_indices = @transform_6, window_bounds = array<i64: 1, 2>}, {pipeline_mode = #tpu.pipeline_mode<synchronous>, transform_indices = @transform_7, window_bounds = array<i64: 4, 2>}, {pipeline_mode = #tpu.pipeline_mode<synchronous>, transform_indices = @transform_8, window_bounds = array<i64: 4, 1>}, {transform_indices = @transform_9, window_bounds = array<i64: 1, 4, 1>}]} {
    %c0_i32 = arith.constant 0 : i32
    %0 = arith.cmpi eq, %arg1, %c0_i32 : i32
    %1 = arith.extui %0 : i1 to i32
    %c0_i32_0 = arith.constant 0 : i32
    %2 = arith.cmpi ne, %1, %c0_i32_0 : i32
    scf.if %2 {
      %cst_14 = arith.constant 0xFF800000 : f32
      %18 = vector.broadcast %cst_14 : f32 to vector<4x1xf32>
      %c0_15 = arith.constant 0 : index
      %c0_16 = arith.constant 0 : index
      %19 = vector.load %arg12[%c0_15, %c0_16] : memref<4x1xf32, #tpu.memory_space<vmem>>, vector<4x1xf32>
      tpu.vector_store %arg12[%c0_15, %c0_16], %18 {strides = array<i32>} : memref<4x1xf32, #tpu.memory_space<vmem>>, vector<4x1xf32>,
      %cst_17 = arith.constant 0.000000e+00 : f32
      %20 = vector.broadcast %cst_17 : f32 to vector<4x1xf32>
      %c0_18 = arith.constant 0 : index
      %c0_19 = arith.constant 0 : index
      %21 = vector.load %arg13[%c0_18, %c0_19] : memref<4x1xf32, #tpu.memory_space<vmem>>, vector<4x1xf32>
      tpu.vector_store %arg13[%c0_18, %c0_19], %20 {strides = array<i32>} : memref<4x1xf32, #tpu.memory_space<vmem>>, vector<4x1xf32>,
    } else {
    }
    %c0 = arith.constant 0 : index
    %c0_1 = arith.constant 0 : index
    %c0_2 = arith.constant 0 : index
    %3 = vector.load %arg2[%c0, %c0_1, %c0_2] : memref<1x4x256xf32, #tpu.memory_space<vmem>>, vector<1x4x256xf32>
    %4 = vector.shape_cast %3 : vector<1x4x256xf32> to vector<4x256xf32>
    %c0_3 = arith.constant 0 : index
    %c0_4 = arith.constant 0 : index
    %5 = vector.load %arg12[%c0_3, %c0_4] : memref<4x1xf32, #tpu.memory_space<vmem>>, vector<4x1xf32>
    %cst = arith.constant dense<0xFF800000> : vector<4xf32>
    %6 = vector.multi_reduction <maximumf>, %4, %cst [1] : vector<4x256xf32> to vector<4xf32>
    %7 = vector.shape_cast %6 : vector<4xf32> to vector<4x1xf32>
    %8 = arith.maximumf %5, %7 : vector<4x1xf32>
    %c0_5 = arith.constant 0 : index
    %c0_6 = arith.constant 0 : index
    %9 = vector.load %arg12[%c0_5, %c0_6] : memref<4x1xf32, #tpu.memory_space<vmem>>, vector<4x1xf32>
    tpu.vector_store %arg12[%c0_5, %c0_6], %8 {strides = array<i32>} : memref<4x1xf32, #tpu.memory_space<vmem>>, vector<4x1xf32>,
    %c0_7 = arith.constant 0 : index
    %c0_8 = arith.constant 0 : index
    %10 = vector.load %arg13[%c0_7, %c0_8] : memref<4x1xf32, #tpu.memory_space<vmem>>, vector<4x1xf32>
    %cst_9 = arith.constant dense<0.000000e+00> : vector<4xf32>
    %11 = vector.multi_reduction <add>, %4, %cst_9 [1] : vector<4x256xf32> to vector<4xf32>
    %12 = vector.shape_cast %11 : vector<4xf32> to vector<4x1xf32>
    %13 = arith.addf %10, %12 : vector<4x1xf32>
    %c0_10 = arith.constant 0 : index
    %c0_11 = arith.constant 0 : index
    %14 = vector.load %arg13[%c0_10, %c0_11] : memref<4x1xf32, #tpu.memory_space<vmem>>, vector<4x1xf32>
    tpu.vector_store %arg13[%c0_10, %c0_11], %13 {strides = array<i32>} : memref<4x1xf32, #tpu.memory_space<vmem>>, vector<4x1xf32>,
    %c0_i32_12 = arith.constant 0 : i32
    %15 = arith.cmpi eq, %arg1, %c0_i32_12 : i32
    %16 = arith.extui %15 : i1 to i32
    %c0_i32_13 = arith.constant 0 : i32
    %17 = arith.cmpi ne, %16, %c0_i32_13 : i32
    scf.if %17 {
      %c0_14 = arith.constant 0 : index
      %c0_15 = arith.constant 0 : index
      %18 = vector.load %arg12[%c0_14, %c0_15] : memref<4x1xf32, #tpu.memory_space<vmem>>, vector<4x1xf32>
      %c0_16 = arith.constant 0 : index
      %c0_17 = arith.constant 0 : index
      %19 = vector.load %arg13[%c0_16, %c0_17] : memref<4x1xf32, #tpu.memory_space<vmem>>, vector<4x1xf32>
      %cst_18 = arith.constant 3.906250e-03 : f32
      %20 = vector.broadcast %cst_18 : f32 to vector<4x1xf32>
      %21 = arith.mulf %19, %20 : vector<4x1xf32>
      %c0_19 = arith.constant 0 : index
      %c0_20 = arith.constant 0 : index
      %22 = vector.load %arg3[%c0_19, %c0_20] : memref<4x2xf32, #tpu.memory_space<vmem>>, vector<4x2xf32>
      %23 = vector.broadcast %18 : vector<4x1xf32> to vector<4x2xf32>
      %24 = arith.mulf %23, %22 : vector<4x2xf32>
      %cst_21 = arith.constant dense<0.000000e+00> : vector<2xf32>
      %25 = vector.multi_reduction <add>, %24, %cst_21 [0] : vector<4x2xf32> to vector<2xf32>
      %26 = vector.shape_cast %25 : vector<2xf32> to vector<1x2xf32>
      %c0_22 = arith.constant 0 : index
      %c0_23 = arith.constant 0 : index
      %27 = vector.load %arg4[%c0_22, %c0_23] : memref<1x2xf32, #tpu.memory_space<vmem>>, vector<1x2xf32>
      %28 = arith.addf %26, %27 : vector<1x2xf32>
      %cst_24 = arith.constant 0.000000e+00 : f32
      %29 = vector.broadcast %cst_24 : f32 to vector<1x2xf32>
      %30 = arith.maximumf %28, %29 : vector<1x2xf32>
      %c0_25 = arith.constant 0 : index
      %c0_26 = arith.constant 0 : index
      %31 = vector.load %arg5[%c0_25, %c0_26] : memref<4x2xf32, #tpu.memory_space<vmem>>, vector<4x2xf32>
      %32 = vector.broadcast %30 : vector<1x2xf32> to vector<4x2xf32>
      %33 = arith.mulf %31, %32 : vector<4x2xf32>
      %cst_27 = arith.constant dense<0.000000e+00> : vector<4xf32>
      %34 = vector.multi_reduction <add>, %33, %cst_27 [1] : vector<4x2xf32> to vector<4xf32>
      %35 = vector.shape_cast %34 : vector<4xf32> to vector<4x1xf32>
      %c0_28 = arith.constant 0 : index
      %c0_29 = arith.constant 0 : index
      %36 = vector.load %arg6[%c0_28, %c0_29] : memref<4x1xf32, #tpu.memory_space<vmem>>, vector<4x1xf32>
      %37 = arith.addf %35, %36 : vector<4x1xf32>
      %cst_30 = arith.constant 0.000000e+00 : f32
      %38 = vector.broadcast %cst_30 : f32 to vector<4x1xf32>
      %39 = arith.subf %38, %37 : vector<4x1xf32>
      %40 = math.exp %39 : vector<4x1xf32>
      %cst_31 = arith.constant 1.000000e+00 : f32
      %41 = vector.broadcast %cst_31 : f32 to vector<4x1xf32>
      %42 = arith.addf %41, %40 : vector<4x1xf32>
      %cst_32 = arith.constant 1.000000e+00 : f32
      %43 = vector.broadcast %cst_32 : f32 to vector<4x1xf32>
      %44 = arith.divf %43, %42 : vector<4x1xf32>
      %c0_33 = arith.constant 0 : index
      %c0_34 = arith.constant 0 : index
      %45 = vector.load %arg7[%c0_33, %c0_34] : memref<4x2xf32, #tpu.memory_space<vmem>>, vector<4x2xf32>
      %46 = vector.broadcast %21 : vector<4x1xf32> to vector<4x2xf32>
      %47 = arith.mulf %46, %45 : vector<4x2xf32>
      %cst_35 = arith.constant dense<0.000000e+00> : vector<2xf32>
      %48 = vector.multi_reduction <add>, %47, %cst_35 [0] : vector<4x2xf32> to vector<2xf32>
      %49 = vector.shape_cast %48 : vector<2xf32> to vector<1x2xf32>
      %c0_36 = arith.constant 0 : index
      %c0_37 = arith.constant 0 : index
      %50 = vector.load %arg8[%c0_36, %c0_37] : memref<1x2xf32, #tpu.memory_space<vmem>>, vector<1x2xf32>
      %51 = arith.addf %49, %50 : vector<1x2xf32>
      %cst_38 = arith.constant 0.000000e+00 : f32
      %52 = vector.broadcast %cst_38 : f32 to vector<1x2xf32>
      %53 = arith.maximumf %51, %52 : vector<1x2xf32>
      %c0_39 = arith.constant 0 : index
      %c0_40 = arith.constant 0 : index
      %54 = vector.load %arg9[%c0_39, %c0_40] : memref<4x2xf32, #tpu.memory_space<vmem>>, vector<4x2xf32>
      %55 = vector.broadcast %53 : vector<1x2xf32> to vector<4x2xf32>
      %56 = arith.mulf %54, %55 : vector<4x2xf32>
      %cst_41 = arith.constant dense<0.000000e+00> : vector<4xf32>
      %57 = vector.multi_reduction <add>, %56, %cst_41 [1] : vector<4x2xf32> to vector<4xf32>
      %58 = vector.shape_cast %57 : vector<4xf32> to vector<4x1xf32>
      %c0_42 = arith.constant 0 : index
      %c0_43 = arith.constant 0 : index
      %59 = vector.load %arg10[%c0_42, %c0_43] : memref<4x1xf32, #tpu.memory_space<vmem>>, vector<4x1xf32>
      %60 = arith.addf %58, %59 : vector<4x1xf32>
      %cst_44 = arith.constant 0.000000e+00 : f32
      %61 = vector.broadcast %cst_44 : f32 to vector<4x1xf32>
      %62 = arith.subf %61, %60 : vector<4x1xf32>
      %63 = math.exp %62 : vector<4x1xf32>
      %cst_45 = arith.constant 1.000000e+00 : f32
      %64 = vector.broadcast %cst_45 : f32 to vector<4x1xf32>
      %65 = arith.addf %64, %63 : vector<4x1xf32>
      %cst_46 = arith.constant 1.000000e+00 : f32
      %66 = vector.broadcast %cst_46 : f32 to vector<4x1xf32>
      %67 = arith.divf %66, %65 : vector<4x1xf32>
      %68 = arith.addf %44, %67 : vector<4x1xf32>
      %cst_47 = arith.constant 0.000000e+00 : f32
      %69 = vector.broadcast %cst_47 : f32 to vector<4x1xf32>
      %70 = arith.subf %69, %68 : vector<4x1xf32>
      %71 = math.exp %70 : vector<4x1xf32>
      %cst_48 = arith.constant 1.000000e+00 : f32
      %72 = vector.broadcast %cst_48 : f32 to vector<4x1xf32>
      %73 = arith.addf %72, %71 : vector<4x1xf32>
      %cst_49 = arith.constant 1.000000e+00 : f32
      %74 = vector.broadcast %cst_49 : f32 to vector<4x1xf32>
      %75 = arith.divf %74, %73 : vector<4x1xf32>
      %76 = vector.shape_cast %75 : vector<4x1xf32> to vector<1x4x1xf32>
      %c0_50 = arith.constant 0 : index
      %c0_51 = arith.constant 0 : index
      %c0_52 = arith.constant 0 : index
      %77 = vector.load %arg11[%c0_50, %c0_51, %c0_52] : memref<1x4x1xf32, #tpu.memory_space<vmem>>, vector<1x4x1xf32>
      tpu.vector_store %arg11[%c0_50, %c0_51, %c0_52], %76 {strides = array<i32>} : memref<1x4x1xf32, #tpu.memory_space<vmem>>, vector<1x4x1xf32>,
    } else {
    }
    return
  }
  func.func @transform_0(%arg0: i32, %arg1: i32) -> (i32, i32, i32) {
    %c0_i32 = arith.constant 0 : i32
    %c0_i32_0 = arith.constant 0 : i32
    return %arg0, %c0_i32, %arg1 : i32, i32, i32
  }
  func.func @transform_1(%arg0: i32, %arg1: i32) -> (i32, i32) {
    %c0_i32 = arith.constant 0 : i32
    %c0_i32_0 = arith.constant 0 : i32
    %c0_i32_1 = arith.constant 0 : i32
    return %c0_i32, %c0_i32_0 : i32, i32
  }
  func.func @transform_2(%arg0: i32, %arg1: i32) -> (i32, i32) {
    %c0_i32 = arith.constant 0 : i32
    %c0_i32_0 = arith.constant 0 : i32
    %c0_i32_1 = arith.constant 0 : i32
    return %c0_i32, %c0_i32_0 : i32, i32
  }
  func.func @transform_3(%arg0: i32, %arg1: i32) -> (i32, i32) {
    %c0_i32 = arith.constant 0 : i32
    %c0_i32_0 = arith.constant 0 : i32
    %c0_i32_1 = arith.constant 0 : i32
    return %c0_i32, %c0_i32_0 : i32, i32
  }
  func.func @transform_4(%arg0: i32, %arg1: i32) -> (i32, i32) {
    %c0_i32 = arith.constant 0 : i32
    %c0_i32_0 = arith.constant 0 : i32
    %c0_i32_1 = arith.constant 0 : i32
    return %c0_i32, %c0_i32_0 : i32, i32
  }
  func.func @transform_5(%arg0: i32, %arg1: i32) -> (i32, i32) {
    %c0_i32 = arith.constant 0 : i32
    %c0_i32_0 = arith.constant 0 : i32
    %c0_i32_1 = arith.constant 0 : i32
    return %c0_i32, %c0_i32_0 : i32, i32
  }
  func.func @transform_6(%arg0: i32, %arg1: i32) -> (i32, i32) {
    %c0_i32 = arith.constant 0 : i32
    %c0_i32_0 = arith.constant 0 : i32
    %c0_i32_1 = arith.constant 0 : i32
    return %c0_i32, %c0_i32_0 : i32, i32
  }
  func.func @transform_7(%arg0: i32, %arg1: i32) -> (i32, i32) {
    %c0_i32 = arith.constant 0 : i32
    %c0_i32_0 = arith.constant 0 : i32
    %c0_i32_1 = arith.constant 0 : i32
    return %c0_i32, %c0_i32_0 : i32, i32
  }
  func.func @transform_8(%arg0: i32, %arg1: i32) -> (i32, i32) {
    %c0_i32 = arith.constant 0 : i32
    %c0_i32_0 = arith.constant 0 : i32
    %c0_i32_1 = arith.constant 0 : i32
    return %c0_i32, %c0_i32_0 : i32, i32
  }
  func.func @transform_9(%arg0: i32, %arg1: i32) -> (i32, i32, i32) {
    %c0_i32 = arith.constant 0 : i32
    %c0_i32_0 = arith.constant 0 : i32
    %c0_i32_1 = arith.constant 0 : i32
    return %arg0, %c0_i32, %c0_i32_0 : i32, i32, i32
  }
}

</mosaic_0001>

<bundles_post_ra>
// kernel: tpu_custom_call.1
= control target key start
LH: loop header
LB: loop body
LE: loop exit
PB: predicated region body
PF: predicated region fallthrough
CT: control target
= control target key end

     0   :  { %s708_s30 = smov 0   ;;  %s710_s10 = smov 0   ;;  %s778_s0 = inlined_call_operand.vmem [shape: f32[2,4,256], index: 0, kind: input, shape index: {}]   ;;  %s779_s1 = inlined_call_operand.vmem [shape: f32[4,2], index: 1, kind: input, shape index: {}]   ;;  %s780_s2 = inlined_call_operand.vmem [shape: f32[1,2], index: 2, kind: input, shape index: {}]   ;;  %s781_s3 = inlined_call_operand.vmem [shape: f32[4,2], index: 3, kind: input, shape index: {}]   ;;  %s782_s4 = inlined_call_operand.vmem [shape: f32[4,1], index: 4, kind: input, shape index: {}]   ;;  %s783_s5 = inlined_call_operand.vmem [shape: f32[4,2], index: 5, kind: input, shape index: {}]   ;;  %s784_s6 = inlined_call_operand.vmem [shape: f32[1,2], index: 6, kind: input, shape index: {}]   ;;  %s785_s7 = inlined_call_operand.vmem [shape: f32[4,2], index: 7, kind: input, shape index: {}]   ;;  %s786_s8 = inlined_call_operand.vmem [shape: f32[4,1], index: 8, kind: input, shape index: {}]   ;;  %s787_s9 = inlined_call_operand.vmem [shape: f32[2,4,1], index: 9, kind: output, shape index: {}]  }
   0x1   :  { %s712_s11 = smov 0  }
   0x2 LB: > { %s31_s12 = sadd.s32 1, %s649_s10  ;;  %p583_p0 = scmp.ge.s32.totalorder %s653_s11, 1  ;;  %s653_s11 = sphi %s712_s11, %s19_s11   ;;  %s649_s10 = sphi %s710_s10, %s789_s10   ;;  %s645_s30 = sphi %s708_s30, %s788_s30  }
   0x3   : > { %p33_p1 = scmp.ge.s32.totalorder %s31_s12, 2  ;;  %p306_p2 = scmp.lt.s32.totalorder %s653_s11, 3 }
   0x5   : > { %s791_s12 = smov (%p33_p1, %s31_s12), 0  ;;  %p307_p3 = pnand %p583_p0, %p306_p2 }
   0x6   : > { %p346_p4 = scmp.lt.s32.totalorder (!%p307_p3), %s645_s30, 1 }
   0x7   : > { %310 = sbr.rel (%p307_p3) target bundleno = 497 (0x1f1), region = 56 }
   0xc   : > { %s793_s30 = smov (!%p346_p4, %s645_s30), 1  ;;  %vm363_vm0 = vcmask 3072   ;;  %v655_v0 = vmov 0.0   ;;  %vm374_vm1 = vcmask 1043456   ;;  %v656_v12 = vmov -inf  }
   0xd   : > { %365 = vst.msk [vmem:[#allocation3] sm:$0xf] %vm363_vm0, %v655_v0  ;;  %s589_s13 = sshll.u32 %s793_s30, 3  ;;  %v657_v13 = vmov 0   ;;  %v402_v23 = vld [vmem:[%s779_s1] sm:$0xf] }
   0xe   : > { %s353_s16 = scalar_lea.vmem %s778_s0, %s589_s13  ;;  %364 = vst.msk [vmem:[#allocation2] sm:$0xf] %vm363_vm0, %v656_v12  ;;  %617 = vset.pattern.permute.xlu1 %v657_v13  ;;  %618 = vset.pattern.permute.xlu0 %v657_v13  ;;  %vm409_vm2 = vcmask 11264   ;;  %v447_v29 = vld [vmem:[%s783_s5] sm:$0xf] }
   0xf   : > { %v366_v1 = vld [vmem:[%s353_s16] sm:$0xff]  ;;  %s586_s16 = sshll.u32 %s793_s30, 2 }
  0x10   : > { %369 = vst [vmem:[#allocation1] ss:$2 sm:$0xff] %v366_v1  ;;  %v417_v37 = vld [vmem:[%s780_s2] sm:$0x1]  ;;  %s358_s19 = scalar_lea.vmem %s787_s9, %s586_s16 }
  0x11   : > { %v420_v44 = vld [vmem:[%s781_s3] sm:$0xf] }
  0x12   : > { %v461_v47 = vld [vmem:[%s784_s6] sm:$0x1] }
  0x13   : > { %v464_v53 = vld [vmem:[%s785_s7] sm:$0xf] }
  0x14   : > { %v383_v14 = vld [vmem:[#allocation3] sm:$0xf]  ;;  %v426_v57 = vld [vmem:[%s782_s4] sm:$0xf] }
  0x15   : > { %v367_v17 = vld [vmem:[#allocation2] sm:$0xf]  ;;  %v470_v62 = vld [vmem:[%s786_s8] sm:$0xf] }
  0x17   : > { %v370_v2 = vld.sshfl [vmem:[#allocation1] sm:$0xff pattern:$0x75316420]  ;;  %v371_v3 = vld.sshfl [vmem:[#allocation1 + $0x8] sm:$0xff pattern:$0x75316420] }
  0x18   : > { %384 = vst [vmem:[#allocation1] ss:$2 sm:$0xff] %v366_v1  ;;  %v375_v9 = vsel %vm374_vm1, %v370_v2, -inf  ;;  %v376_v10 = vsel %vm374_vm1, %v371_v3, -inf }
  0x19   : > { %v377_v11 = vmax.f32 %v375_v9, %v376_v10 }
  0x1f   : > { %v385_v4 = vld.sshfl [vmem:[#allocation1] sm:$0xff pattern:$0x75316420]  ;;  %v386_v5 = vld.sshfl [vmem:[#allocation1 + $0x8] sm:$0xff pattern:$0x75316420] }
  0x20   : > { %v389_v6 = vsel %vm374_vm1, %v385_v4, 0.0  ;;  %v390_v7 = vsel %vm374_vm1, %v386_v5, 0.0 }
  0x21   : > { %v391_v8 = vadd.f32 %v390_v7, %v389_v6 }
  0x23   : > { %392 = vadd.xlane.f32.xlu0 %v391_v8 }
  0x2b   : > { %378 = vmax.xlane.f32.xlu0 %v377_v11 }
  0x96   : > { %v393_v15 = vpop.xlane.xlu0 %392 }
  0x97   : > { %v394_v16 = vadd.f32 %v393_v15, %v383_v14 }
  0x99   : > { %395 = vst.msk [vmem:[#allocation3] sm:$0xf] %vm363_vm0, %v394_v16 }
  0x9e   : > { %v379_v18 = vpop.xlane.xlu0 %378 }
  0x9f   : > { %v380_v19 = vmax.f32 %v367_v17, %v379_v18 }
  0xa0   : > { %v400_v21 = vld [vmem:[#allocation3] sm:$0xf] }
  0xa1   : > { %382 = vst.msk [vmem:[#allocation2] sm:$0xf] %vm363_vm0, %v380_v19  ;;  %v401_v22 = vmul.f32 0.00390625, %v400_v21 }
  0xa8   : > { %v399_v20 = vld [vmem:[#allocation2] sm:$0xf] }
  0xa9   : > { %405 = vperm.xlu1 %617, %v399_v20  }
  0xb1   : > { %450 = vperm.xlu1 %617, %v401_v22  }
 0x11b   : > { %v406_v24 = vpop.permute.xlu1 %405 }
 0x11c   : > { %v408_v25 = vmul.f32 %v406_v24, %v402_v23 }
 0x11e   : > { %v410_v26 = vsel %vm409_vm2, %v408_v25, 0.0 }
 0x11f   : > { %v411_v27 = vrot.slane %v410_v26, 4 }
 0x121   : > { %v412_v28 = vadd.f32 %v411_v27, %v410_v26 }
 0x123   : > { %v413_v30 = vrot.slane %v412_v28, 2  ;;  %v451_v31 = vpop.permute.xlu1 %450 }
 0x124   : > { %v453_v32 = vmul.f32 %v451_v31, %v447_v29 }
 0x125   : > { %v414_v33 = vadd.f32 %v413_v30, %v412_v28 }
 0x126   : > { %v454_v34 = vsel %vm409_vm2, %v453_v32, 0.0 }
 0x127   : > { %v415_v35 = vrot.slane %v414_v33, 1  ;;  %v455_v36 = vrot.slane %v454_v34, 4 }
 0x129   : > { %v456_v38 = vadd.f32 %v455_v36, %v454_v34  ;;  %v416_v39 = vadd.f32 %v415_v35, %v414_v33 }
 0x12b   : > { %v457_v40 = vrot.slane %v456_v38, 2  ;;  %v418_v41 = vadd.f32 %v417_v37, %v416_v39 }
 0x12d   : > { %v458_v42 = vadd.f32 %v457_v40, %v456_v38  ;;  %v419_v43 = vmax.f32 %v418_v41, 0.0 }
 0x12f   : > { %v459_v45 = vrot.slane %v458_v42, 1  ;;  %v421_v46 = vperm.slane %v419_v43, 0 }
 0x131   : > { %v422_v48 = vmul.f32 %v421_v46, %v420_v44  ;;  %v460_v49 = vadd.f32 %v459_v45, %v458_v42 }
 0x133   : > { %v423_v50 = vsel %vm409_vm2, %v422_v48, 0.0  ;;  %v462_v51 = vadd.f32 %v461_v47, %v460_v49 }
 0x134   : > { %424 = vadd.xlane.f32.xlu2 %v423_v50 }
 0x135   : > { %v463_v52 = vmax.f32 %v462_v51, 0.0 }
 0x137   : > { %v465_v54 = vperm.slane %v463_v52, 0 }
 0x139   : > { %v466_v55 = vmul.f32 %v465_v54, %v464_v53 }
 0x13b   : > { %v467_v56 = vsel %vm409_vm2, %v466_v55, 0.0 }
 0x13c   : > { %468 = vadd.xlane.f32.xlu2 %v467_v56 }
 0x1a7   : > { %v425_v58 = vpop.xlane.xlu2 %424 }
 0x1a8   : > { %v427_v59 = vadd.f32 %v426_v57, %v425_v58 }
 0x1aa   : > { %v428_v60 = vsub.f32 0.0, %v427_v59 }
 0x1ac   : > { %v429_v61 = vmul.f32 1.442695, %v428_v60 }
 0x1ae   : > { %619 = vpow2.f32 %v429_v61 }
 0x1af   : > { %v469_v63 = vpop.xlane.xlu2 %468 }
 0x1b0   : > { %v471_v0 = vadd.f32 %v470_v62, %v469_v63 }
 0x1b2   : > { %v472_v1 = vsub.f32 0.0, %v471_v0 }
 0x1b4   : > { %v620_v2 = vpop.eup %619  ;;  %v473_v3 = vmul.f32 1.442695, %v472_v1 }
 0x1b5   : > { %v431_v4 = vadd.f32 1.0, %v620_v2 }
 0x1b6   : > { %621 = vpow2.f32 %v473_v3 }
 0x1b7   : > { %623 = vrcp.f32 %v431_v4  ;;  %vm437_vm4 = vweird.f32 %v431_v4  ;;  %v443_v15 = vand.u32 2147483648, %v431_v4  ;;  %v441_v17 = vand.u32 2147483647, %v431_v4 }
 0x1b9   : > { %v444_v22 = vor.u32 1.1754944e-38, %v443_v15  ;;  %vm442_vm9 = vcmp.eq.f32.partialorder %v441_v17, 8.507059e+37 }
 0x1bc   : > { %v622_v5 = vpop.eup %621 }
 0x1bd   : > { %v624_v6 = vpop.eup %623  ;;  %v475_v7 = vadd.f32 1.0, %v622_v5 }
 0x1be   : > { %v433_v8 = vmul.f32 %v624_v6, %v431_v4  ;;  %vm438_vm3 = vweird.f32 %v624_v6 }
 0x1bf   : > { %625 = vrcp.f32 %v475_v7  ;;  %v487_v16 = vand.u32 2147483648, %v475_v7  ;;  %v485_v19 = vand.u32 2147483647, %v475_v7  ;;  %vm439_vm6 = vmor %vm437_vm4, %vm438_vm3  ;;  %vm481_vm7 = vweird.f32 %v475_v7 }
 0x1c0   : > { %v434_v9 = vsub.f32 1.0, %v433_v8 }
 0x1c1   : > { %v488_v23 = vor.u32 1.1754944e-38, %v487_v16  ;;  %vm486_vm10 = vcmp.eq.f32.partialorder %v485_v19, 8.507059e+37 }
 0x1c2   : > { %v435_v10 = vmul.f32 %v624_v6, %v434_v9 }
 0x1c4   : > { %v436_v13 = vadd.f32 %v624_v6, %v435_v10 }
 0x1c5   : > { %v626_v11 = vpop.eup %625 }
 0x1c6   : > { %v477_v12 = vmul.f32 %v626_v11, %v475_v7  ;;  %vm482_vm5 = vweird.f32 %v626_v11  ;;  %v440_v20 = vsel %vm439_vm6, %v624_v6, %v436_v13 }
 0x1c7   : > { %vm483_vm8 = vmor %vm481_vm7, %vm482_vm5  ;;  %v445_v25 = vsel %vm442_vm9, %v444_v22, %v440_v20 }
 0x1c8   : > { %v478_v14 = vsub.f32 1.0, %v477_v12 }
 0x1ca   : > { %v479_v18 = vmul.f32 %v626_v11, %v478_v14 }
 0x1cc   : > { %v480_v21 = vadd.f32 %v626_v11, %v479_v18 }
 0x1ce   : > { %v484_v24 = vsel %vm483_vm8, %v626_v11, %v480_v21 }
 0x1cf   : > { %v489_v26 = vsel %vm486_vm10, %v488_v23, %v484_v24 }
 0x1d0   : > { %v491_v27 = vadd.f32 %v489_v26, %v445_v25 }
 0x1d2   : > { %v492_v28 = vsub.f32 0.0, %v491_v27 }
 0x1d4   : > { %v493_v29 = vmul.f32 1.442695, %v492_v28 }
 0x1d6   : > { %627 = vpow2.f32 %v493_v29 }
 0x1dc   : > { %v628_v30 = vpop.eup %627 }
 0x1dd   : > { %v495_v31 = vadd.f32 1.0, %v628_v30 }
 0x1df   : > { %629 = vrcp.f32 %v495_v31  ;;  %v507_v35 = vand.u32 2147483648, %v495_v31  ;;  %v505_v37 = vand.u32 2147483647, %v495_v31  ;;  %vm501_vm12 = vweird.f32 %v495_v31 }
 0x1e1   : > { %v508_v39 = vor.u32 1.1754944e-38, %v507_v35  ;;  %vm506_vm14 = vcmp.eq.f32.partialorder %v505_v37, 8.507059e+37 }
 0x1e5   : > { %v630_v32 = vpop.eup %629 }
 0x1e6   : > { %v497_v33 = vmul.f32 %v630_v32, %v495_v31  ;;  %vm502_vm11 = vweird.f32 %v630_v32 }
 0x1e7   : > { %vm503_vm13 = vmor %vm501_vm12, %vm502_vm11 }
 0x1e8   : > { %v498_v34 = vsub.f32 1.0, %v497_v33 }
 0x1ea   : > { %v499_v36 = vmul.f32 %v630_v32, %v498_v34 }
 0x1ec   : > { %v500_v38 = vadd.f32 %v630_v32, %v499_v36 }
 0x1ee   : > { %v504_v40 = vsel %vm503_vm13, %v630_v32, %v500_v38 }
 0x1ef   : > { %v509_v41 = vsel %vm506_vm14, %v508_v39, %v504_v40 }
 0x1f0   : > { %511 = vst.msk [vmem:[%s358_s19] sm:$0xf] %vm363_vm0, %v509_v41 }
 0x1f1 PF: > { %s19_s11 = sadd.s32 1, %s653_s11   ;;  %s788_s30 = smov %s649_s10 }
 0x1f2   : > { %p16_p5 = scmp.ge.s32.totalorder %s19_s11, 4   ;;  %s789_s10 = smov %s791_s12 }
 0x1f4   :  { %18 = sbr.rel (!%p16_p5) target bundleno = 2 (0x2), region = 94 }

</bundles_post_ra>
